<compile_context>
chip_gen: v7x
topology: tpu7x:2x2x1
jax: 0.10.0
libtpu: 0.0.40
codegen_flags: <defaults>
</compile_context>

<pallas_src>
import functools

import jax
import jax.numpy as jnp
from jax.experimental import pallas as pl
from jax.experimental.pallas import tpu as pltpu


# ----------------------------------------------------------------------------
# Kernel
# ----------------------------------------------------------------------------
def rbf_kernel(x_ref, xsq_ref, ct_ref, bg_ref, o_ref):
    # x_ref:   (TB, F)   batch tile of inputs
    # xsq_ref: (TB, 1)   precomputed ||x||^2 (wrapper-side, once per call)
    # ct_ref:  (F, TO)   centres^T, out-feature tile
    # bg_ref:  (2, TO)   row 0: ||c||^2, row 1: 1/sigma^2
    # o_ref:   (TB, TO)
    xc = jnp.dot(x_ref[...], ct_ref[...], preferred_element_type=jnp.float32)
    bg = bg_ref[...]
    beta = bg[0:1, :]       # (1, TO)
    gamma = bg[1:2, :]      # (1, TO)
    d2 = xsq_ref[...] + beta - 2.0 * xc
    # Cancellation can produce tiny negative d2; clamp so exp(...) <= 1.
    d2 = jnp.maximum(d2, 0.0)
    o_ref[...] = jnp.exp(-d2 * gamma).astype(o_ref.dtype)


# ----------------------------------------------------------------------------
# Tiling / padding helpers
# ----------------------------------------------------------------------------
def _round_up(x, m):
    return ((x + m - 1) // m) * m


_DEFAULT_VMEM_BUDGET = 24 << 20   # per-step footprint budget (double-buffered)
_VMEM_LIMIT_BYTES = 48 << 20      # scoped VMEM limit (safe on v5e/v6e/v7x)


def _choose_tile_out(F, O, budget_bytes=_DEFAULT_VMEM_BUDGET):
    # Lane-dense output tiles; cap at 512 so O >= 1024 gets >=2 parallel
    # blocks (lets dimension_semantics shard across v7x's 2 TensorCores).
    tile_out = min(_round_up(O, 128), 512)
    # Keep the double-buffered (F, tile_out) centres tile under ~half budget.
    while tile_out > 128 and 2 * 4 * F * tile_out > budget_bytes // 2:
        tile_out = max(128, (tile_out // 2) // 128 * 128)
    return tile_out


def _choose_tile_b(B, F, tile_out, budget_bytes=_DEFAULT_VMEM_BUDGET):
    # Large tile_b amortises the centres DMA across the batch and feeds the
    # MXU a tall M; shrink only if the per-step footprint exceeds the budget.
    tile_b = min(_round_up(B, 8), 1024)

    def step_bytes(tb):
        # x + xsq + centres^T + bg + out, f32, double-buffered.
        return 2 * 4 * (tb * F + tb + F * tile_out + 2 * tile_out + tb * tile_out)

    while tile_b > 8 and step_bytes(tile_b) > budget_bytes:
        tile_b = max(8, (tile_b // 2) // 8 * 8)
    return tile_b


# ----------------------------------------------------------------------------
# Forward (jitted; centre-derived constants are passed in, not rebuilt)
# ----------------------------------------------------------------------------
@functools.partial(jax.jit, static_argnames=("out_features", "tile_out", "tile_b"))
def _rbf_pallas_forward(x, c_t, bg, *, out_features, tile_out, tile_b):
    B, F = x.shape
    O_pad = c_t.shape[1]

    xf = x.astype(jnp.float32)
    xsq = jnp.sum(xf * xf, axis=-1, keepdims=True)          # (B, 1), once per call

    B_pad = _round_up(B, tile_b)
    if B_pad != B:
        pad = B_pad - B
        xf = jnp.pad(xf, ((0, pad), (0, 0)))
        xsq = jnp.pad(xsq, ((0, pad), (0, 0)))

    grid = (B_pad // tile_b, O_pad // tile_out)

    out = pl.pallas_call(
        rbf_kernel,
        out_shape=jax.ShapeDtypeStruct((B_pad, O_pad), jnp.float32),
        grid_spec=pltpu.PrefetchScalarGridSpec(
            num_scalar_prefetch=0,
            grid=grid,
            in_specs=[
                pl.BlockSpec((tile_b, F), lambda i, j: (i, 0)),      # x batch tile
                pl.BlockSpec((tile_b, 1), lambda i, j: (i, 0)),      # ||x||^2
                pl.BlockSpec((F, tile_out), lambda i, j: (0, j)),    # centres^T
                pl.BlockSpec((2, tile_out), lambda i, j: (0, j)),    # [beta; gamma]
            ],
            out_specs=pl.BlockSpec((tile_b, tile_out), lambda i, j: (i, j)),
        ),
        compiler_params=pltpu.CompilerParams(
            dimension_semantics=("parallel", "parallel"),
            vmem_limit_bytes=_VMEM_LIMIT_BYTES,
        ),
    )(xf, xsq, c_t, bg)

    if B_pad != B or O_pad != out_features:
        out = out[:B, :out_features]
    return out


# ----------------------------------------------------------------------------
# Module-like wrapper: centre preprocessing done ONCE here.
# ----------------------------------------------------------------------------
class RBFPallas:
    def __init__(self, centres, sigmas, *, vmem_budget_bytes=_DEFAULT_VMEM_BUDGET):
        O, F = centres.shape
        assert sigmas.shape == (O,)
        self.in_features = F
        self.out_features = O
        self.vmem_budget_bytes = vmem_budget_bytes
        self.tile_out = _choose_tile_out(F, O, vmem_budget_bytes)

        O_pad = _round_up(O, self.tile_out)
        cf = centres.astype(jnp.float32)
        sf = sigmas.astype(jnp.float32)
        beta = jnp.sum(cf * cf, axis=-1)                     # ||c||^2, (O,)
        gamma = 1.0 / (sf * sf)                              # 1/sigma^2, (O,)
        c_t = cf.T                                           # (F, O)
        if O_pad != O:
            pad = O_pad - O
            c_t = jnp.pad(c_t, ((0, 0), (0, pad)))
            beta = jnp.pad(beta, (0, pad))
            gamma = jnp.pad(gamma, (0, pad), constant_values=1.0)  # finite in pad
        self.c_t = c_t                                       # (F, O_pad)
        self.bg = jnp.stack([beta, gamma], axis=0)           # (2, O_pad)

    def __call__(self, x):
        B, F = x.shape
        assert F == self.in_features
        tile_b = _choose_tile_b(B, F, self.tile_out, self.vmem_budget_bytes)
        return _rbf_pallas_forward(
            x, self.c_t, self.bg,
            out_features=self.out_features,
            tile_out=self.tile_out,
            tile_b=tile_b,
        )


def rbf_reference(x, centres, sigmas):
    # Pure-JAX reference matching the PyTorch forward exactly.
    diff = x[:, None, :] - centres[None, :, :]
    dist = jnp.sqrt(jnp.sum(diff * diff, axis=-1)) / sigmas[None, :]
    return jnp.exp(-(dist * dist))


if __name__ == "__main__":
    key = jax.random.PRNGKey(0)
    kx, kc, kx2, kc2 = jax.random.split(key, 4)

    # --- Check 1: module-default init (centres ~ N(0,1), sigma = 0.5) -------
    B, in_features, out_features = 8, 32, 256
    x = jax.random.normal(kx, (B, in_features), dtype=jnp.float32)
    centres = jax.random.normal(kc, (out_features, in_features), dtype=jnp.float32)
    sigmas = jnp.full((out_features,), 0.5, dtype=jnp.float32)

    rbf = RBFPallas(centres, sigmas)
    out = jax.block_until_ready(rbf(x))
    ref = rbf_reference(x, centres, sigmas)
    assert out.shape == (B, out_features)
    assert jnp.allclose(out, ref, atol=1e-5, rtol=1e-5), "mismatch vs reference"

    # --- Check 2: non-multiple shapes exercise the padding path -------------
    B2, out_features2 = 5, 200
    x2 = 0.2 * jax.random.normal(kx2, (B2, in_features), dtype=jnp.float32)
    centres2 = 0.2 * jax.random.normal(
        kc2, (out_features2, in_features), dtype=jnp.float32)
    sigmas2 = jnp.full((out_features2,), 1.5, dtype=jnp.float32)

    rbf2 = RBFPallas(centres2, sigmas2)
    out2 = jax.block_until_ready(rbf2(x2))
    ref2 = rbf_reference(x2, centres2, sigmas2)
    assert out2.shape == (B2, out_features2)
    assert jnp.allclose(out2, ref2, atol=1e-5, rtol=1e-4), "mismatch vs reference (2)"

    print("KERNEL_OK")
</pallas_src>

<mosaic_0001>
module attributes {stable_mosaic.version = 11 : i64} {
  func.func @rbf_kernel(%arg0: i32, %arg1: i32, %arg2: memref<8x32xf32, #tpu.memory_space<vmem>>, %arg3: memref<8x1xf32, #tpu.memory_space<vmem>>, %arg4: memref<32x256xf32, #tpu.memory_space<vmem>>, %arg5: memref<2x256xf32, #tpu.memory_space<vmem>>, %arg6: memref<8x256xf32, #tpu.memory_space<vmem>>) attributes {dimension_semantics = [#tpu.dimension_semantics<parallel>, #tpu.dimension_semantics<parallel>], iteration_bounds = array<i64: 1, 1>, scalar_prefetch = 0 : i64, scratch_operands = 0 : i64, tpu.core_type = #tpu.core_type<tc>, window_params = [{transform_indices = @transform_0, window_bounds = array<i64: 8, 32>}, {transform_indices = @transform_1, window_bounds = array<i64: 8, 1>}, {transform_indices = @transform_2, window_bounds = array<i64: 32, 256>}, {transform_indices = @transform_3, window_bounds = array<i64: 2, 256>}, {transform_indices = @transform_4, window_bounds = array<i64: 8, 256>}]} {
    %c0 = arith.constant 0 : index
    %c0_0 = arith.constant 0 : index
    %0 = vector.load %arg2[%c0, %c0_0] : memref<8x32xf32, #tpu.memory_space<vmem>>, vector<8x32xf32>
    %c0_1 = arith.constant 0 : index
    %c0_2 = arith.constant 0 : index
    %1 = vector.load %arg4[%c0_1, %c0_2] : memref<32x256xf32, #tpu.memory_space<vmem>>, vector<32x256xf32>
    %cst = arith.constant dense<0.000000e+00> : vector<8x256xf32>
    %2 = tpu.matmul %0, %1, %cst {dimension_numbers = #tpu.dot_dimension_numbers<[1], [0], [0], [1], [0, 0, 1, 1], [], []>} : vector<8x32xf32>, vector<32x256xf32>, vector<8x256xf32> -> vector<8x256xf32>
    %c0_3 = arith.constant 0 : index
    %c0_4 = arith.constant 0 : index
    %3 = vector.load %arg5[%c0_3, %c0_4] : memref<2x256xf32, #tpu.memory_space<vmem>>, vector<2x256xf32>
    %4 = vector.extract_strided_slice %3 {offsets = [0, 0], sizes = [1, 256], strides = [1, 1]} : vector<2x256xf32> to vector<1x256xf32>
    %5 = vector.extract_strided_slice %3 {offsets = [1, 0], sizes = [1, 256], strides = [1, 1]} : vector<2x256xf32> to vector<1x256xf32>
    %c0_5 = arith.constant 0 : index
    %c0_6 = arith.constant 0 : index
    %6 = vector.load %arg3[%c0_5, %c0_6] : memref<8x1xf32, #tpu.memory_space<vmem>>, vector<8x1xf32>
    %7 = vector.broadcast %6 : vector<8x1xf32> to vector<8x256xf32>
    %8 = vector.broadcast %4 : vector<1x256xf32> to vector<8x256xf32>
    %9 = arith.addf %7, %8 : vector<8x256xf32>
    %cst_7 = arith.constant 2.000000e+00 : f32
    %10 = vector.broadcast %cst_7 : f32 to vector<8x256xf32>
    %11 = arith.mulf %10, %2 : vector<8x256xf32>
    %12 = arith.subf %9, %11 : vector<8x256xf32>
    %cst_8 = arith.constant 0.000000e+00 : f32
    %13 = vector.broadcast %cst_8 : f32 to vector<8x256xf32>
    %14 = arith.maximumf %12, %13 : vector<8x256xf32>
    %cst_9 = arith.constant 0.000000e+00 : f32
    %15 = vector.broadcast %cst_9 : f32 to vector<8x256xf32>
    %16 = arith.subf %15, %14 : vector<8x256xf32>
    %17 = vector.broadcast %5 : vector<1x256xf32> to vector<8x256xf32>
    %18 = arith.mulf %16, %17 : vector<8x256xf32>
    %19 = math.exp %18 : vector<8x256xf32>
    %c0_10 = arith.constant 0 : index
    %c0_11 = arith.constant 0 : index
    %20 = vector.load %arg6[%c0_10, %c0_11] : memref<8x256xf32, #tpu.memory_space<vmem>>, vector<8x256xf32>
    tpu.vector_store %arg6[%c0_10, %c0_11], %19 {strides = array<i32>} : memref<8x256xf32, #tpu.memory_space<vmem>>, vector<8x256xf32>,
    return
  }
  func.func @transform_0(%arg0: i32, %arg1: i32) -> (i32, i32) {
    %c0_i32 = arith.constant 0 : i32
    %c0_i32_0 = arith.constant 0 : i32
    return %arg0, %c0_i32 : i32, i32
  }
  func.func @transform_1(%arg0: i32, %arg1: i32) -> (i32, i32) {
    %c0_i32 = arith.constant 0 : i32
    %c0_i32_0 = arith.constant 0 : i32
    return %arg0, %c0_i32 : i32, i32
  }
  func.func @transform_2(%arg0: i32, %arg1: i32) -> (i32, i32) {
    %c0_i32 = arith.constant 0 : i32
    %c0_i32_0 = arith.constant 0 : i32
    return %c0_i32, %arg1 : i32, i32
  }
  func.func @transform_3(%arg0: i32, %arg1: i32) -> (i32, i32) {
    %c0_i32 = arith.constant 0 : i32
    %c0_i32_0 = arith.constant 0 : i32
    return %c0_i32, %arg1 : i32, i32
  }
  func.func @transform_4(%arg0: i32, %arg1: i32) -> (i32, i32) {
    %c0_i32 = arith.constant 0 : i32
    return %arg0, %arg1 : i32, i32
  }
}

</mosaic_0001>

<bundles_post_ra>
// kernel: _rbf_pallas_forward.1
= control target key start
LH: loop header
LB: loop body
LE: loop exit
PB: predicated region body
PF: predicated region fallthrough
CT: control target
= control target key end

     0   :  { %9 = vsyncpa [#allocation3], 0  ;;  %s325_s0 = inlined_call_operand.vmem [shape: f32[8,32], index: 0, kind: input, shape index: {}]   ;;  %s326_s1 = inlined_call_operand.vmem [shape: f32[8,1], index: 1, kind: input, shape index: {}]   ;;  %s327_s2 = inlined_call_operand.hbm [shape: f32[32,256], index: 2, kind: input, shape index: {}]   ;;  %s328_s3 = inlined_call_operand.vmem [shape: f32[2,256], index: 3, kind: input, shape index: {}]   ;;  %s329_s4 = inlined_call_operand.hbm [shape: f32[8,256], index: 4, kind: output, shape index: {}]  }
   0x1   :  { %10 = vsyncpa [#allocation4], 0  ;;  %s261_s15 = smov [#allocation2]   ;;  %s213_s19 = scalar_lea.hbm %s327_s2, 1024 }
   0x2   :  { %s20_s16 = sshll.u32 %s261_s15, 4  ;;  %p214_p0 = scmp.ne.s32.totalorder %s327_s2, %s213_s19  ;;  %s21_s16 = int_to_ptr.vmem [resolvable:$true] %s20_s16 }
   0x3   :  { %p217_p1 = scmp.lt.u32.totalorder %s213_s19, %s327_s2 }
   0x5   :  { %p219_p2 = pnand %p217_p1, %p214_p0 }
   0x7   :  { %222 = shalt.err (!%p219_p2)
}
   0x8   :  { %s223_s24 = scalar_lea.vmem %s21_s16, 1024  ;;  %p228_p4 = scmp.lt.s32.totalorder %s21_s16, %s21_s16 }
   0x9   :  { %p224_p3 = scmp.ne.s32.totalorder %s21_s16, %s223_s24  ;;  %p229_p5 = scmp.lt.s32.totalorder %s223_s24, %s223_s24 }
   0xb   :  { %p230_p6 = por %p229_p5, %p228_p4 }
   0xd   :  { %p231_p7 = pnand %p230_p6, %p224_p3 }
   0xf   :  { %234 = shalt.err (!%p231_p7)
}
  0x10   :  { %s262_s25 = smov 256   ;;  %s263_s26 = smov 16  }
  0x11   :  { %26 = dma.hbm_to_vmem [thread:$0]  %s327_s2, 1024, %s21_s16, [#allocation3], %s262_s25, %s262_s25, %s263_s26  }
  0x12   :  { %257 = dma.done.wait [#allocation3], 1024  }
  0x13   :  { %258 = vsyncadd [#allocation3], 4294966272  ;;  %v264_v0 = vmov 0.0   ;;  %v265_v1 = vmov 0   ;;  %v34_v2 = vld [vmem:[#allocation2 + $0x8] sm:$0xff]  ;;  %v36_v3 = vld [vmem:[#allocation2 + $0x18] sm:$0xff]  ;;  %v124_v16 = vlaneseq }
  0x14   :  { %109 = vmatprep.mubr.f32.mxu0 %v264_v0  ;;  %208 = vset.pattern.permute.xlu0 %v265_v1  ;;  %v33_v4 = vld [vmem:[#allocation2] sm:$0xff]  ;;  %v194_v5 = vpack.c.bf16 %v36_v3, %v34_v2  ;;  %v35_v6 = vld [vmem:[#allocation2 + $0x10] sm:$0xff]  ;;  %v38_v7 = vld [vmem:[#allocation2 + $0x28] sm:$0xff]  ;;  %vm41_vm0 = vcmask 261120  }
  0x15   :  { %v40_v8 = vld [vmem:[#allocation2 + $0x38] sm:$0xff]  ;;  %v196_v9 = vpack.c.bf16 %v35_v6, %v33_v4  ;;  %v37_v11 = vld [vmem:[#allocation2 + $0x20] sm:$0xff]  ;;  %v39_v12 = vld [vmem:[#allocation2 + $0x30] sm:$0xff]  ;;  %v125_v17 = vshrl.u32 %v124_v16, 7 }
  0x16   :  { %v198_v10 = vpack.c.bf16 %v40_v8, %v38_v7  ;;  %195 = vmatprep.subr.bf16.mxu0 %v194_v5  ;;  %v117_v13 = vld [vmem:[%s326_s1] sm:$0xff]  ;;  %v200_v14 = vpack.c.bf16 %v39_v12, %v37_v11 }
  0x17   :  { %197 = vmatpush1.bf16.msra.mxu0 %v196_v9  ;;  %120 = vperm.xlu0 %208, %v117_v13   ;;  %v32_v15 = vld [vmem:[%s325_s0] sm:$0xff]  ;;  %v126_v18 = vsub.s32 0, %v125_v17  ;;  %v130_v19 = vsub.s32 2, %v125_v17  ;;  %v154_v26 = vsub.s32 1, %v125_v17  ;;  %v158_v27 = vsub.s32 3, %v125_v17  ;;  %s266_s0 = smov [#allocation5]  }
  0x18   :  { %199 = vmatprep.subr.bf16.mxu0 %v198_v10  ;;  %v116_v20 = vld [vmem:[%s328_s3] sm:$0xf]  ;;  %s184_s1 = sshll.u32 %s266_s0, 4  ;;  %s185_s1 = int_to_ptr.vmem [resolvable:$true] %s184_s1 }
  0x19   :  { %v127_v21 = vrot.slane %v116_v20, %v126_v18  ;;  %v131_v22 = vrot.slane %v116_v20, %v130_v19  ;;  %v155_v32 = vrot.slane %v116_v20, %v154_v26  ;;  %v159_v35 = vrot.slane %v116_v20, %v158_v27  ;;  %s235_s3 = scalar_lea.vmem %s185_s1, 256  ;;  %p240_p9 = scmp.lt.s32.totalorder %s185_s1, %s185_s1 }
  0x1a   :  { %p236_p8 = scmp.ne.s32.totalorder %s185_s1, %s235_s3  ;;  %p241_p10 = scmp.lt.s32.totalorder %s235_s3, %s235_s3 }
  0x1b   :  { %201 = vmatpush1.bf16.msra.mxu0 %v200_v14  ;;  %v137_v23 = vrot.slane %v127_v21, %v126_v18  ;;  %v141_v25 = vrot.slane %v131_v22, %v126_v18  ;;  %v165_v39 = vrot.slane %v155_v32, %v154_v26  ;;  %v169_v41 = vrot.slane %v159_v35, %v154_v26 }
  0x1c   :  { %p242_p11 = por %p241_p10, %p240_p9 }
  0x1e   :  { %193 = vmatmul.mubr.msk.f32.vlgmr.msra.gmra.mrb[0].mxu0 %vm41_vm0, %v32_v15  ;;  %p243_p12 = pnand %p242_p11, %p236_p8 }
  0x96   :  { %v121_v24 = vpop.permute.xlu0 %120 }
  0x97   :  { %v142_v28 = vadd.f32 %v137_v23, %v121_v24  ;;  %v143_v29 = vadd.f32 %v141_v25, %v121_v24 }
  0xf1   :  { %v111_v30 = vpop.f32.mrb[0].mxu0 }
  0xf2   :  { %v144_v31 = vmul.f32 2.0, %v111_v30  ;;  %v113_v33 = vpop.f32.mrb[1].mxu0 }
  0xf3   :  { %v145_v34 = vmul.f32 2.0, %v113_v33 }
  0xf4   :  { %v146_v36 = vsub.f32 %v142_v28, %v144_v31 }
  0xf5   :  { %v147_v37 = vsub.f32 %v143_v29, %v145_v34 }
  0xf6   :  { %v148_v38 = vmax.f32 %v146_v36, 0.0 }
  0xf7   :  { %v149_v40 = vmax.f32 %v147_v37, 0.0 }
  0xf8   :  { %v150_v42 = vsub.f32 0.0, %v148_v38 }
  0xf9   :  { %v151_v43 = vsub.f32 0.0, %v149_v40 }
  0xfa   :  { %v170_v44 = vmul.f32 %v165_v39, %v150_v42 }
  0xfb   :  { %v171_v45 = vmul.f32 %v169_v41, %v151_v43 }
  0xfc   :  { %v172_v46 = vmul.f32 1.442695, %v170_v44 }
  0xfd   :  { %v174_v47 = vmul.f32 1.442695, %v171_v45 }
  0xfe   :  { %209 = vpow2.f32 %v172_v46 }
  0xff   :  { %211 = vpow2.f32 %v174_v47 }
 0x108   :  { %v210_v48 = vpop.eup %209 }
 0x109   :  { %v212_v49 = vpop.eup %211  ;;  %176 = vst [vmem:[#allocation5] sm:$0xff] %v210_v48 }
 0x10a   :  { %177 = vst [vmem:[#allocation5 + $0x8] sm:$0xff] %v212_v49 }
 0x10b   :  { %246 = shalt.err (!%p243_p12)
}
 0x10c   :  { %s247_s10 = scalar_lea.hbm %s329_s4, 256 }
 0x10d   :  { %p248_p13 = scmp.ne.s32.totalorder %s329_s4, %s247_s10  ;;  %p251_p0 = scmp.lt.u32.totalorder %s247_s10, %s329_s4 }
 0x10f   :  { %p253_p1 = pnand %p251_p0, %p248_p13 }
 0x111   :  { %256 = shalt.err (!%p253_p1)
}
 0x112   :  { %187 = dma.vmem_to_hbm [thread:$0]  %s185_s1, 256, %s329_s4, [#allocation4]  }
 0x113   :  { %259 = dma.done.wait [#allocation4], 256  }
 0x114   :  { %260 = vsyncadd [#allocation4], 4294967040 }
 0x115   :  { %191 = vsyncpa [#allocation3], 1 }
 0x116   :  { %192 = vsyncpa [#allocation4], 1 }

</bundles_post_ra>
